<compile_context>
chip_gen: v7x
topology: tpu7x:2x2x1
jax: 0.10.0
libtpu: 0.0.40
codegen_flags: <defaults>
</compile_context>

<pallas_src>
import functools

import jax
import jax.numpy as jnp
from jax.experimental import pallas as pl
from jax.experimental.pallas import tpu as pltpu


def _valuenet_kernel(x_ref, w1_ref, b1_ref, w2_ref, b2_ref, o_ref, *, fc2_on_mxu):
    # x_ref : (S, TB)  feature-major input tile (lane-dense, streamed per step)
    # w1_ref: (H, S)   fc1 weight, torch Linear layout (VMEM-resident)
    # b1_ref: (H, 1)   fc1 bias as a column (broadcast along lanes)
    # w2_ref: (H, 1)   fc2 weight as a column
    # b2_ref: (1, 1)   fc2 bias
    # o_ref : (1, TB)  lane-dense f32 output row for this batch tile

    # fc1: single MXU pass, natural [H,S] x [S,TB] orientation, f32 accumulate.
    h = jnp.dot(w1_ref[...], x_ref[...], preferred_element_type=jnp.float32)  # (H, TB)
    h = jnp.maximum(h + b1_ref[...], 0.0)          # bias + ReLU on the VPU (f32)

    if fc2_on_mxu:
        # v6e/v7x option: offload fc2 to the (otherwise idle) MXU to relieve
        # the VALU slot when the f32 epilogue is the limiter at large tb.
        y = jnp.dot(w2_ref[...].T, h, preferred_element_type=jnp.float32) + b2_ref[...]
    else:
        # Default (best on HBM-bound v5e): VPU multiply + XLU sublane reduce.
        y = jnp.sum(h * w2_ref[...], axis=0, keepdims=True) + b2_ref[...]

    o_ref[...] = y.astype(o_ref.dtype)             # (1, TB) lane-dense store


def _round_up(n, m):
    return ((n + m - 1) // m) * m


def value_net_forward(x, w1, b1, w2, b2, *, block_batch=8192, fc2_on_mxu=False):
    """x: [B, state_dim] (f32 or bf16); w1: [hidden, state_dim] (torch fc1.weight
    layout); b1: [hidden, 1]; w2: [hidden, 1] (fc2.weight transposed); b2: [1, 1]
    -> [B, 1] float32."""
    B, S = x.shape
    H = w1.shape[0]

    # 128-aligned batch tiles: lane-dense output stores + valid (S, tb) x block.
    # Small batches use a single 128-wide tile (no padding beyond 128).
    if B <= block_batch:
        tb = max(128, _round_up(B, 128))
    else:
        tb = _round_up(block_batch, 128)
    b_pad = _round_up(B, tb)
    num_tiles = b_pad // tb

    # Feature-major x: [S, B_pad].  Wrapper-side transpose is layout plumbing;
    # callers with very large batches can hold x feature-major to avoid it.
    x_fm = x.T
    if b_pad != B:
        x_fm = jnp.pad(x_fm, ((0, 0), (0, b_pad - B)))

    flops = 2 * b_pad * S * H + 2 * b_pad * H
    bytes_accessed = (
        x_fm.size * x_fm.dtype.itemsize
        + w1.size * w1.dtype.itemsize
        + b1.size * b1.dtype.itemsize
        + w2.size * w2.dtype.itemsize
        + b2.size * b2.dtype.itemsize
        + b_pad * 4)  # f32 output row

    kernel = functools.partial(_valuenet_kernel, fc2_on_mxu=fc2_on_mxu)

    out_row = pl.pallas_call(
        kernel,
        # Output forced to f32 even when x is fed as bf16.
        out_shape=jax.ShapeDtypeStruct((1, b_pad), jnp.float32),
        grid_spec=pltpu.PrefetchScalarGridSpec(
            num_scalar_prefetch=0,
            grid=(num_tiles,),
            in_specs=[
                # x streams one lane-dense (S, tb) tile per step (double-buffered).
                pl.BlockSpec((S, tb), lambda i: (0, i)),
                # Weights / biases: same block every step -> VMEM-resident.
                pl.BlockSpec(w1.shape, lambda i: (0, 0)),
                pl.BlockSpec(b1.shape, lambda i: (0, 0)),
                pl.BlockSpec(w2.shape, lambda i: (0, 0)),
                pl.BlockSpec(b2.shape, lambda i: (0, 0)),
            ],
            # Lane-dense (1, tb) output row per tile.
            out_specs=pl.BlockSpec((1, tb), lambda i: (0, i)),
        ),
        compiler_params=pltpu.CompilerParams(
            dimension_semantics=("parallel",),   # shards batch tiles across TCs on v7x
        ),
        cost_estimate=pl.CostEstimate(
            flops=flops, transcendentals=0, bytes_accessed=bytes_accessed),
    )(x_fm, w1, b1, w2, b2)

    # [1, B_pad] row -> [B, 1] (wrapper-side layout plumbing; drops pad rows).
    return out_row.reshape(b_pad)[:B].reshape(B, 1)


def init_params(key, state_dim, hidden_dim, dtype=jnp.float32):
    """Deterministic init mimicking torch.nn.Linear default U(+-1/sqrt(fan_in)).
    Kernel-friendly layouts: w1 keeps torch [out, in]; b1/w2 stored as columns."""
    k1, k2, k3, k4 = jax.random.split(key, 4)
    bound1 = 1.0 / (state_dim ** 0.5)
    bound2 = 1.0 / (hidden_dim ** 0.5)
    w1 = jax.random.uniform(k1, (hidden_dim, state_dim), dtype, -bound1, bound1)
    b1 = jax.random.uniform(k2, (hidden_dim, 1), dtype, -bound1, bound1)
    w2 = jax.random.uniform(k3, (hidden_dim, 1), dtype, -bound2, bound2)
    b2 = jax.random.uniform(k4, (1, 1), dtype, -bound2, bound2)
    return w1, b1, w2, b2


def reference_forward(x, w1, b1, w2, b2):
    h = jnp.maximum(x @ w1.T + b1.T, 0.0)
    return h @ w2 + b2


if __name__ == "__main__":
    key = jax.random.PRNGKey(0)
    kx, kp = jax.random.split(key)

    state_dim, hidden_dim = 8, 32
    w1, b1, w2, b2 = init_params(kp, state_dim, hidden_dim)

    # Case 1: small batch -> single 128-wide tile (no padding beyond 128).
    x_small = jax.random.normal(kx, (64, state_dim), dtype=jnp.float32)
    out_small = jax.block_until_ready(value_net_forward(x_small, w1, b1, w2, b2))
    ref_small = reference_forward(x_small, w1, b1, w2, b2)
    assert out_small.shape == (64, 1), out_small.shape
    assert jnp.allclose(out_small, ref_small, atol=1e-4, rtol=1e-4)

    # Case 2: batch tiling + padding (B=300, tb=128 -> 3 tiles), VPU fc2.
    x_big = jax.random.normal(kx, (300, state_dim), dtype=jnp.float32)
    out_big = jax.block_until_ready(
        value_net_forward(x_big, w1, b1, w2, b2, block_batch=128))
    ref_big = reference_forward(x_big, w1, b1, w2, b2)
    assert out_big.shape == (300, 1), out_big.shape
    assert jnp.allclose(out_big, ref_big, atol=1e-4, rtol=1e-4)

    # Case 3: fc2 on the MXU (v6e/v7x VALU-relief option).
    out_mxu = jax.block_until_ready(
        value_net_forward(x_big, w1, b1, w2, b2, block_batch=128, fc2_on_mxu=True))
    assert out_mxu.shape == (300, 1), out_mxu.shape
    assert jnp.allclose(out_mxu, ref_big, atol=2e-3, rtol=2e-3)

    # Case 4: bf16 x stream (halves x HBM bytes on v5e/v6e); output stays f32.
    x_bf16 = x_big.astype(jnp.bfloat16)
    out_bf16 = jax.block_until_ready(
        value_net_forward(x_bf16, w1, b1, w2, b2, block_batch=128))
    assert out_bf16.dtype == jnp.float32, out_bf16.dtype
    assert jnp.allclose(out_bf16, ref_big, atol=2e-1)

    print("KERNEL_OK")
</pallas_src>

<mosaic_0001>
module attributes {stable_mosaic.version = 11 : i64} {
  func.func @_valuenet_kernel(%arg0: i32, %arg1: memref<8x128xf32, #tpu.memory_space<vmem>>, %arg2: memref<32x8xf32, #tpu.memory_space<vmem>>, %arg3: memref<32x1xf32, #tpu.memory_space<vmem>>, %arg4: memref<32x1xf32, #tpu.memory_space<vmem>>, %arg5: memref<1x1xf32, #tpu.memory_space<vmem>>, %arg6: memref<1x128xf32, #tpu.memory_space<vmem>>) attributes {dimension_semantics = [#tpu.dimension_semantics<parallel>], iteration_bounds = array<i64: 1>, scalar_prefetch = 0 : i64, scratch_operands = 0 : i64, tpu.core_type = #tpu.core_type<tc>, window_params = [{transform_indices = @transform_0, window_bounds = array<i64: 8, 128>}, {pipeline_mode = #tpu.pipeline_mode<synchronous>, transform_indices = @transform_1, window_bounds = array<i64: 32, 8>}, {pipeline_mode = #tpu.pipeline_mode<synchronous>, transform_indices = @transform_2, window_bounds = array<i64: 32, 1>}, {pipeline_mode = #tpu.pipeline_mode<synchronous>, transform_indices = @transform_3, window_bounds = array<i64: 32, 1>}, {pipeline_mode = #tpu.pipeline_mode<synchronous>, transform_indices = @transform_4, window_bounds = array<i64: 1, 1>}, {transform_indices = @transform_5, window_bounds = array<i64: 1, 128>}]} {
    %c0 = arith.constant 0 : index
    %c0_0 = arith.constant 0 : index
    %0 = vector.load %arg2[%c0, %c0_0] : memref<32x8xf32, #tpu.memory_space<vmem>>, vector<32x8xf32>
    %c0_1 = arith.constant 0 : index
    %c0_2 = arith.constant 0 : index
    %1 = vector.load %arg1[%c0_1, %c0_2] : memref<8x128xf32, #tpu.memory_space<vmem>>, vector<8x128xf32>
    %cst = arith.constant dense<0.000000e+00> : vector<32x128xf32>
    %2 = tpu.matmul %0, %1, %cst {dimension_numbers = #tpu.dot_dimension_numbers<[1], [0], [0], [1], [0, 0, 1, 1], [], []>} : vector<32x8xf32>, vector<8x128xf32>, vector<32x128xf32> -> vector<32x128xf32>
    %c0_3 = arith.constant 0 : index
    %c0_4 = arith.constant 0 : index
    %3 = vector.load %arg3[%c0_3, %c0_4] : memref<32x1xf32, #tpu.memory_space<vmem>>, vector<32x1xf32>
    %4 = vector.broadcast %3 : vector<32x1xf32> to vector<32x128xf32>
    %5 = arith.addf %2, %4 : vector<32x128xf32>
    %cst_5 = arith.constant 0.000000e+00 : f32
    %6 = vector.broadcast %cst_5 : f32 to vector<32x128xf32>
    %7 = arith.maximumf %5, %6 : vector<32x128xf32>
    %c0_6 = arith.constant 0 : index
    %c0_7 = arith.constant 0 : index
    %8 = vector.load %arg4[%c0_6, %c0_7] : memref<32x1xf32, #tpu.memory_space<vmem>>, vector<32x1xf32>
    %9 = vector.broadcast %8 : vector<32x1xf32> to vector<32x128xf32>
    %10 = arith.mulf %7, %9 : vector<32x128xf32>
    %cst_8 = arith.constant dense<0.000000e+00> : vector<128xf32>
    %11 = vector.multi_reduction <add>, %10, %cst_8 [0] : vector<32x128xf32> to vector<128xf32>
    %12 = vector.shape_cast %11 : vector<128xf32> to vector<1x128xf32>
    %c0_9 = arith.constant 0 : index
    %c0_10 = arith.constant 0 : index
    %13 = vector.load %arg5[%c0_9, %c0_10] : memref<1x1xf32, #tpu.memory_space<vmem>>, vector<1x1xf32>
    %14 = vector.broadcast %13 : vector<1x1xf32> to vector<1x128xf32>
    %15 = arith.addf %12, %14 : vector<1x128xf32>
    %c0_11 = arith.constant 0 : index
    %c0_12 = arith.constant 0 : index
    %16 = vector.load %arg6[%c0_11, %c0_12] : memref<1x128xf32, #tpu.memory_space<vmem>>, vector<1x128xf32>
    tpu.vector_store %arg6[%c0_11, %c0_12], %15 {strides = array<i32>} : memref<1x128xf32, #tpu.memory_space<vmem>>, vector<1x128xf32>,
    return
  }
  func.func @transform_0(%arg0: i32) -> (i32, i32) {
    %c0_i32 = arith.constant 0 : i32
    %c0_i32_0 = arith.constant 0 : i32
    return %c0_i32, %arg0 : i32, i32
  }
  func.func @transform_1(%arg0: i32) -> (i32, i32) {
    %c0_i32 = arith.constant 0 : i32
    %c0_i32_0 = arith.constant 0 : i32
    %c0_i32_1 = arith.constant 0 : i32
    return %c0_i32, %c0_i32_0 : i32, i32
  }
  func.func @transform_2(%arg0: i32) -> (i32, i32) {
    %c0_i32 = arith.constant 0 : i32
    %c0_i32_0 = arith.constant 0 : i32
    %c0_i32_1 = arith.constant 0 : i32
    return %c0_i32, %c0_i32_0 : i32, i32
  }
  func.func @transform_3(%arg0: i32) -> (i32, i32) {
    %c0_i32 = arith.constant 0 : i32
    %c0_i32_0 = arith.constant 0 : i32
    %c0_i32_1 = arith.constant 0 : i32
    return %c0_i32, %c0_i32_0 : i32, i32
  }
  func.func @transform_4(%arg0: i32) -> (i32, i32) {
    %c0_i32 = arith.constant 0 : i32
    %c0_i32_0 = arith.constant 0 : i32
    %c0_i32_1 = arith.constant 0 : i32
    return %c0_i32, %c0_i32_0 : i32, i32
  }
  func.func @transform_5(%arg0: i32) -> (i32, i32) {
    %c0_i32 = arith.constant 0 : i32
    %c0_i32_0 = arith.constant 0 : i32
    return %c0_i32, %arg0 : i32, i32
  }
}

</mosaic_0001>

<bundles_post_ra>
// kernel: tpu_custom_call.1
= control target key start
LH: loop header
LB: loop body
LE: loop exit
PB: predicated region body
PF: predicated region fallthrough
CT: control target
= control target key end

     0   :  { %s350_s0 = inlined_call_operand.vmem [shape: f32[8,128], index: 0, kind: input, shape index: {}]   ;;  %s351_s1 = inlined_call_operand.vmem [shape: f32[32,8], index: 1, kind: input, shape index: {}]   ;;  %s352_s2 = inlined_call_operand.vmem [shape: f32[32,1], index: 2, kind: input, shape index: {}]   ;;  %s353_s3 = inlined_call_operand.vmem [shape: f32[32,1], index: 3, kind: input, shape index: {}]   ;;  %s354_s4 = inlined_call_operand.<no memory space> [shape: f32[1,1], index: 4, kind: input, shape index: {}]   ;;  %s355_s5 = inlined_call_operand.hbm [shape: f32[1,128], index: 5, kind: output, shape index: {}]  }
   0x1   :  { %v10_v0 = vstv %s354_s4 }
   0x2   :  { %11 = vst [vmem:[#allocation2] sm:$0x1] %v10_v0 }
   0x3   :  { %v27_v1 = vld [vmem:[%s350_s0] sm:$0xff]  ;;  %vm52_vm0 = vcmask 64512   ;;  %v25_v3 = vld [vmem:[%s351_s1 + $0x10] sm:$0xff]  ;;  %v24_v4 = vld [vmem:[%s351_s1 + $0x8] sm:$0xff] }
   0x4   :  { %v23_v2 = vld [vmem:[%s351_s1] sm:$0xff]  ;;  %226 = vmatprep.subr.mxu0 %v27_v1  ;;  %234 = vmatprep.subr.mxu1 %v27_v1  ;;  %v26_v5 = vld [vmem:[%s351_s1 + $0x18] sm:$0xff]  ;;  %v30_v7 = vld [vmem:[%s352_s2 + $0x10] sm:$0xff] }
   0x5   :  { %227 = vmatpush3.msra.mxu0 %v27_v1  ;;  %235 = vmatpush3.msra.mxu1 %v27_v1  ;;  %v28_v6 = vld [vmem:[%s352_s2] sm:$0xff] }
   0x6   :  { %228 = vmatprep.mubr.msk.f32.mxu0 %vm52_vm0, %v23_v2  ;;  %231 = vmatprep.mubr.msk.f32.mxu1 %vm52_vm0, %v25_v3 }
   0x7   :  { %229 = vmatmul.mubr.msk.f32.vlgmr.msra.gmra.mrb[0].mxu0 %vm52_vm0, %v24_v4  ;;  %232 = vmatmul.mubr.msk.f32.vlgmr.msra.gmra.mrb[0].mxu1 %vm52_vm0, %v26_v5 }
   0x8   :  { %12 = vsyncpa [#allocation4], 0  ;;  %v264_v8 = vmov 0   ;;  %v29_v9 = vld [vmem:[%s352_s2 + $0x8] sm:$0xff]  ;;  %v31_v10 = vld [vmem:[%s352_s2 + $0x18] sm:$0xff]  ;;  %v197_v42 = vlaneseq  ;;  %s265_s2 = smov [#allocation3]  }
   0x9   :  { %238 = vset.pattern.permute.xlu0 %v264_v8  ;;  %239 = vset.pattern.permute.xlu1 %v264_v8  ;;  %v154_v11 = vld [vmem:[%s353_s3] sm:$0xff]  ;;  %v155_v12 = vld [vmem:[%s353_s3 + $0x8] sm:$0xff]  ;;  %v156_v13 = vld [vmem:[%s353_s3 + $0x10] sm:$0xff] }
   0xa   :  { %34 = vperm.xlu0 %238, %v28_v6   ;;  %44 = vperm.xlu1 %239, %v30_v7   ;;  %v157_v14 = vld [vmem:[%s353_s3 + $0x18] sm:$0xff]  ;;  %v191_v15 = vld [vmem:[#allocation2] sm:$0x1]  ;;  %v198_v45 = vshrl.u32 %v197_v42, 7  ;;  %s209_s3 = sshll.u32 %s265_s2, 4  ;;  %s210_s3 = int_to_ptr.vmem [resolvable:$true] %s209_s3 }
   0xb   :  { %s240_s18 = scalar_lea.vmem %s210_s3, 16  ;;  %s244_s19 = scalar_lea.vmem %s210_s3, 32 }
   0xc   :  { %v199_v48 = vsub.s32 0, %v198_v45  ;;  %p241_p0 = scmp.ne.s32.totalorder %s210_s3, %s240_s18  ;;  %p245_p1 = scmp.lt.s32.totalorder %s210_s3, %s210_s3 }
   0xd   :  { %p246_p2 = scmp.lt.s32.totalorder %s244_s19, %s240_s18 }
   0xe   :  { %39 = vperm.xlu0 %238, %v29_v9   ;;  %49 = vperm.xlu1 %239, %v31_v10  }
   0xf   :  { %p247_p3 = por %p246_p2, %p245_p1 }
  0x11   :  { %p248_p4 = pnand %p247_p3, %p241_p0 }
  0x12   :  { %160 = vperm.xlu0 %238, %v154_v11   ;;  %165 = vperm.xlu1 %239, %v155_v12  }
  0x16   :  { %170 = vperm.xlu0 %238, %v156_v13   ;;  %175 = vperm.xlu1 %239, %v157_v14  }
  0x1a   :  { %194 = vperm.xlu0 %238, %v191_v15  }
  0x89   :  { %v35_v16 = vpop.permute.xlu0 %34  ;;  %v45_v17 = vpop.permute.xlu1 %44 }
  0x8d   :  { %v40_v18 = vpop.permute.xlu0 %39  ;;  %v50_v19 = vpop.permute.xlu1 %49 }
  0x91   :  { %v161_v20 = vpop.permute.xlu0 %160  ;;  %v166_v29 = vpop.permute.xlu1 %165 }
  0x95   :  { %v171_v36 = vpop.permute.xlu0 %170  ;;  %v176_v39 = vpop.permute.xlu1 %175 }
  0x99   :  { %v195_v50 = vpop.permute.xlu0 %194 }
  0x9a   :  { %v200_v52 = vrot.slane %v195_v50, %v199_v48 }
  0xda   :  { %v230_v21 = vpop.f32.mrb[0].mxu0  ;;  %v233_v22 = vpop.f32.mrb[0].mxu1 }
  0xdb   :  { %v137_v23 = vadd.f32 %v230_v21, %v40_v18  ;;  %v131_v24 = vpop.f32.mrb[1].mxu0  ;;  %v141_v25 = vpop.f32.mrb[1].mxu1  ;;  %v147_v26 = vadd.f32 %v233_v22, %v50_v19 }
  0xdc   :  { %v132_v27 = vadd.f32 %v131_v24, %v35_v16  ;;  %v142_v28 = vadd.f32 %v141_v25, %v45_v17 }
  0xdd   :  { %v151_v30 = vmax.f32 %v137_v23, 0.0  ;;  %v153_v34 = vmax.f32 %v147_v26, 0.0 }
  0xde   :  { %v150_v31 = vmax.f32 %v132_v27, 0.0  ;;  %v152_v32 = vmax.f32 %v142_v28, 0.0 }
  0xdf   :  { %v179_v33 = vmul.f32 %v166_v29, %v151_v30  ;;  %v181_v40 = vmul.f32 %v176_v39, %v153_v34 }
  0xe0   :  { %v178_v35 = vmul.f32 %v161_v20, %v150_v31  ;;  %v180_v38 = vmul.f32 %v171_v36, %v152_v32 }
  0xe2   :  { %v182_v37 = vadd.f32 %v179_v33, %v178_v35 }
  0xe4   :  { %v183_v41 = vadd.f32 %v182_v37, %v180_v38 }
  0xe6   :  { %v184_v43 = vadd.f32 %v183_v41, %v181_v40 }
  0xe8   :  { %v185_v44 = vrot.slane %v184_v43, 4 }
  0xea   :  { %v186_v46 = vadd.f32 %v185_v44, %v184_v43 }
  0xec   :  { %v187_v47 = vrot.slane %v186_v46, 2 }
  0xee   :  { %v188_v49 = vadd.f32 %v187_v47, %v186_v46 }
  0xf0   :  { %v189_v51 = vrot.slane %v188_v49, 1 }
  0xf2   :  { %v190_v53 = vadd.f32 %v189_v51, %v188_v49 }
  0xf4   :  { %v201_v54 = vadd.f32 %v200_v52, %v190_v53 }
  0xf6   :  { %202 = vst [vmem:[#allocation3] sm:$0x1] %v201_v54 }
  0xf7   :  { %251 = shalt.err (!%p248_p4)
}
  0xf8   :  { %s252_s22 = scalar_lea.hbm %s355_s5, 16 }
  0xf9   :  { %p253_p5 = scmp.ne.s32.totalorder %s355_s5, %s252_s22  ;;  %p256_p6 = scmp.lt.u32.totalorder %s252_s22, %s355_s5 }
  0xfb   :  { %p258_p7 = pnand %p256_p6, %p253_p5 }
  0xfd   :  { %261 = shalt.err (!%p258_p7)
}
  0xfe   :  { %212 = dma.vmem_to_hbm [thread:$0]  %s210_s3, 16, %s355_s5, [#allocation4]  }
  0xff   :  { %262 = dma.done.wait [#allocation4], 16  }
 0x100   :  { %263 = vsyncadd [#allocation4], 4294967280 }
 0x101   :  { %216 = vsyncpa [#allocation4], 1 }

</bundles_post_ra>
